<compile_context>
chip_gen: v7x
topology: tpu7x:2x2x1
jax: 0.10.0
libtpu: 0.0.40
codegen_flags: <defaults>
</compile_context>

<pallas_src>
import jax
import jax.numpy as jnp
from jax import lax
from jax.experimental import pallas as pl
from jax.experimental.pallas import tpu as pltpu


def make_attention_kernel(num_heads, head_dim, q_tile):
    H, Dh, Tq = num_heads, head_dim, q_tile
    C = H * Dh

    def kernel(x_ref, wq_ref, wkv_ref, wp_ref, bp_ref, o_ref, k_scr, v_scr):
        f32, bf16 = jnp.float32, jnp.bfloat16
        N = x_ref.shape[1]

        # ---- Once per batch element: full-sequence K/V projection, cached in
        # VMEM scratch (bf16, head-major).  Reused by every query tile.
        @pl.when(pl.program_id(1) == 0)
        def _fill_kv_cache():
            xs = x_ref[0].astype(bf16)                                     # (N, C)
            kv = jnp.dot(xs, wkv_ref[...], preferred_element_type=f32)     # (N, 2C)
            kv = kv.astype(bf16)
            for h in range(H):                                             # head-major relayout
                k_scr[h] = kv[:, h * Dh:(h + 1) * Dh]                      # (N, Dh)
                v_scr[h] = kv[:, C + h * Dh:C + (h + 1) * Dh]              # (N, Dh)

        # ---- Per query tile: slice query rows out of the resident x block.
        start = pl.multiple_of(pl.program_id(1) * Tq, Tq)
        xq = x_ref[0, pl.ds(start, Tq), :].astype(bf16)                    # (Tq, C)
        # scale (head_dim**-0.5) is folded into wq in the wrapper.
        q = jnp.dot(xq, wq_ref[...], preferred_element_type=f32).astype(bf16)  # (Tq, C)

        # Per-head attention: statically unrolled loop of 2-D matmuls.
        y = jnp.zeros((Tq, C), f32)
        for h in range(H):
            q_h = q[:, h * Dh:(h + 1) * Dh]                                # (Tq, Dh) bf16
            k_h = k_scr[h]                                                 # (N, Dh)  bf16
            v_h = v_scr[h]                                                 # (N, Dh)  bf16
            # q_h @ k_h^T with f32 accumulation
            s = lax.dot_general(q_h, k_h, (((1,), (1,)), ((), ())),
                                preferred_element_type=f32)                # (Tq, N)
            s = s - jnp.max(s, axis=-1, keepdims=True)
            p = jnp.exp(s)
            p = p * pl.reciprocal(jnp.sum(p, axis=-1, keepdims=True), approx=True)
            # attn_drop is identity (p = 0.0)
            o_h = jnp.dot(p.astype(bf16), v_h, preferred_element_type=f32)  # (Tq, Dh)
            # Output projection fused head-by-head: y += o_h @ Wp[h]
            y = y + jnp.dot(o_h.astype(bf16), wp_ref[h],
                            preferred_element_type=f32)                    # (Tq, C)

        # proj_drop is identity (p = 0.0)
        o_ref[0] = (y + bp_ref[...]).astype(o_ref.dtype)

    return kernel


def attention_pallas(x, wqkv_t, wp_t, bp, num_heads, *, q_tile=256):
    """x: (B, N, C); wqkv_t: (C, 3C) = qkv.weight.T; wp_t: (C, C) = proj.weight.T;
    bp: (C,) = proj.bias."""
    B, N, C = x.shape
    assert C % num_heads == 0
    H = num_heads
    Dh = C // H
    scale = Dh ** (-0.5)

    # ---- Wrapper-side weight repacking (plain XLA, once per call) ----
    # wqkv_t column order follows the PyTorch reshape [3, H, Dh].
    wq_s = (wqkv_t[:, 0:C] * scale).astype(jnp.bfloat16)          # (C, C), scale folded in
    wkv = wqkv_t[:, C:3 * C].astype(jnp.bfloat16)                 # (C, 2C)  [K | V] columns
    wp_h = wp_t.reshape(H, Dh, C).astype(jnp.bfloat16)            # (H, Dh, C)
    bp2 = bp.reshape(1, C).astype(jnp.float32)

    # Query tile must divide N so the in-kernel pl.ds slice stays in bounds.
    tq = min(q_tile, N)
    if N % tq != 0:
        tq = next(d for d in range(tq, 0, -1) if N % d == 0)
    n_q = N // tq

    kernel = make_attention_kernel(H, Dh, tq)

    x_spec = pl.BlockSpec((1, N, C), lambda b, i: (b, 0, 0))
    # Grid-constant operands: single-buffered (pure VMEM recovery).
    wq_spec = pl.BlockSpec((C, C), lambda b, i: (0, 0),
                           pipeline_mode=pl.Buffered(1))
    wkv_spec = pl.BlockSpec((C, 2 * C), lambda b, i: (0, 0),
                            pipeline_mode=pl.Buffered(1))
    wp_spec = pl.BlockSpec((H, Dh, C), lambda b, i: (0, 0, 0),
                           pipeline_mode=pl.Buffered(1))
    bp_spec = pl.BlockSpec((1, C), lambda b, i: (0, 0),
                           pipeline_mode=pl.Buffered(1))
    out_spec = pl.BlockSpec((1, tq, C), lambda b, i: (b, i, 0))

    flops = B * (8 * N * C * C + 4 * N * N * C)
    bytes_accessed = (4 * B * N * C                                 # x (once per batch elem)
                      + 2 * (C * C + 2 * C * C + C * C) + 4 * C     # bf16 weights + f32 bias
                      + 4 * B * N * C)                              # output
    cost = pl.CostEstimate(flops=flops,
                           transcendentals=B * H * N * N,
                           bytes_accessed=bytes_accessed)

    return pl.pallas_call(
        kernel,
        out_shape=jax.ShapeDtypeStruct((B, N, C), x.dtype),
        grid_spec=pltpu.PrefetchScalarGridSpec(
            num_scalar_prefetch=0,
            grid=(B, n_q),
            in_specs=[x_spec, wq_spec, wkv_spec, wp_spec, bp_spec],
            out_specs=out_spec,
            scratch_shapes=[pltpu.VMEM((H, N, Dh), jnp.bfloat16),   # K cache
                            pltpu.VMEM((H, N, Dh), jnp.bfloat16)],  # V cache
        ),
        compiler_params=pltpu.CompilerParams(
            # Batch axis parallel (megacore); query-tile axis must be
            # "arbitrary" because the K/V scratch carries state across it.
            dimension_semantics=("parallel", "arbitrary"),
            vmem_limit_bytes=64 * 1024 * 1024,
        ),
        cost_estimate=cost,
    )(x, wq_s, wkv, wp_h, bp2)


def reference_jax(x, wqkv_t, wp_t, bp, num_heads):
    """Pure-JAX f32 reference matching the PyTorch forward exactly."""
    B, N, C = x.shape
    H = num_heads
    Dh = C // H
    scale = Dh ** (-0.5)

    qkv = (x @ wqkv_t).reshape(B, N, 3, H, Dh)
    qkv = jnp.transpose(qkv, (2, 0, 3, 1, 4))            # (3, B, H, N, Dh)
    q, k, v = qkv[0], qkv[1], qkv[2]
    attn = jnp.einsum('bhnd,bhmd->bhnm', q, k) * scale
    attn = jax.nn.softmax(attn, axis=-1)
    out = jnp.einsum('bhnm,bhmd->bhnd', attn, v)
    out = jnp.transpose(out, (0, 2, 1, 3)).reshape(B, N, C)
    return out @ wp_t + bp.reshape(1, 1, C)


if __name__ == "__main__":
    B, N, C = 2, 8, 32
    num_heads = 4

    key = jax.random.PRNGKey(0)
    kx, kw1, kw2, kb = jax.random.split(key, 4)
    x = jax.random.normal(kx, (B, N, C), jnp.float32)
    w_scale = C ** (-0.5)
    wqkv_t = w_scale * jax.random.normal(kw1, (C, 3 * C), jnp.float32)  # qkv.weight.T
    wp_t = w_scale * jax.random.normal(kw2, (C, C), jnp.float32)        # proj.weight.T
    bp = 0.1 * jax.random.normal(kb, (C,), jnp.float32)                 # proj.bias

    out = attention_pallas(x, wqkv_t, wp_t, bp, num_heads)
    out = jax.block_until_ready(out)

    ref = jax.block_until_ready(reference_jax(x, wqkv_t, wp_t, bp, num_heads))
    assert out.shape == (B, N, C)
    # bf16 MXU operands (f32 accumulation) + approx EUP reciprocal -> compare to
    # the f32 reference with a bf16-appropriate tolerance (inference precision).
    err = jnp.max(jnp.abs(out - ref))
    assert jnp.allclose(out, ref, atol=2e-2, rtol=2e-2), f"max abs err {err}"

    print("KERNEL_OK")
</pallas_src>

<mosaic_0001>
module attributes {stable_mosaic.version = 11 : i64} {
  func.func @kernel(%arg0: i32, %arg1: i32, %arg2: memref<1x8x32xf32, #tpu.memory_space<vmem>>, %arg3: memref<32x32xbf16, #tpu.memory_space<vmem>>, %arg4: memref<32x64xbf16, #tpu.memory_space<vmem>>, %arg5: memref<4x8x32xbf16, #tpu.memory_space<vmem>>, %arg6: memref<1x32xf32, #tpu.memory_space<vmem>>, %arg7: memref<1x8x32xf32, #tpu.memory_space<vmem>>, %arg8: memref<4x8x8xbf16, #tpu.memory_space<vmem>>, %arg9: memref<4x8x8xbf16, #tpu.memory_space<vmem>>) attributes {dimension_semantics = [#tpu.dimension_semantics<parallel>, #tpu.dimension_semantics<arbitrary>], iteration_bounds = array<i64: 2, 1>, scalar_prefetch = 0 : i64, scratch_operands = 2 : i64, tpu.core_type = #tpu.core_type<tc>, window_params = [{transform_indices = @transform_0, window_bounds = array<i64: 1, 8, 32>}, {pipeline_mode = #tpu.pipeline_mode<synchronous>, transform_indices = @transform_1, window_bounds = array<i64: 32, 32>}, {pipeline_mode = #tpu.pipeline_mode<synchronous>, transform_indices = @transform_2, window_bounds = array<i64: 32, 64>}, {pipeline_mode = #tpu.pipeline_mode<synchronous>, transform_indices = @transform_3, window_bounds = array<i64: 4, 8, 32>}, {pipeline_mode = #tpu.pipeline_mode<synchronous>, transform_indices = @transform_4, window_bounds = array<i64: 1, 32>}, {transform_indices = @transform_5, window_bounds = array<i64: 1, 8, 32>}]} {
    %c0_i32 = arith.constant 0 : i32
    %0 = arith.cmpi eq, %arg1, %c0_i32 : i32
    %1 = arith.extui %0 : i1 to i32
    %c0_i32_0 = arith.constant 0 : i32
    %2 = arith.cmpi ne, %1, %c0_i32_0 : i32
    scf.if %2 {
      %c0_63 = arith.constant 0 : index
      %c0_64 = arith.constant 0 : index
      %c0_65 = arith.constant 0 : index
      %111 = vector.load %arg2[%c0_63, %c0_64, %c0_65] : memref<1x8x32xf32, #tpu.memory_space<vmem>>, vector<1x8x32xf32>
      %112 = vector.shape_cast %111 : vector<1x8x32xf32> to vector<8x32xf32>
      %113 = arith.truncf %112 : vector<8x32xf32> to vector<8x32xbf16>
      %c0_66 = arith.constant 0 : index
      %c0_67 = arith.constant 0 : index
      %114 = vector.load %arg4[%c0_66, %c0_67] : memref<32x64xbf16, #tpu.memory_space<vmem>>, vector<32x64xbf16>
      %cst_68 = arith.constant dense<0.000000e+00> : vector<8x64xf32>
      %115 = tpu.matmul %113, %114, %cst_68 {dimension_numbers = #tpu.dot_dimension_numbers<[1], [0], [0], [1], [0, 0, 1, 1], [], []>} : vector<8x32xbf16>, vector<32x64xbf16>, vector<8x64xf32> -> vector<8x64xf32>
      %116 = arith.truncf %115 : vector<8x64xf32> to vector<8x64xbf16>
      %117 = vector.extract_strided_slice %116 {offsets = [0, 0], sizes = [8, 8], strides = [1, 1]} : vector<8x64xbf16> to vector<8x8xbf16>
      %c0_69 = arith.constant 0 : index
      %c0_70 = arith.constant 0 : index
      %c0_71 = arith.constant 0 : index
      %118 = vector.load %arg8[%c0_69, %c0_70, %c0_71] : memref<4x8x8xbf16, #tpu.memory_space<vmem>>, vector<1x8x8xbf16>
      %119 = vector.shape_cast %118 : vector<1x8x8xbf16> to vector<8x8xbf16>
      %120 = vector.shape_cast %117 : vector<8x8xbf16> to vector<1x8x8xbf16>
      tpu.vector_store %arg8[%c0_69, %c0_70, %c0_71], %120 {strides = array<i32>} : memref<4x8x8xbf16, #tpu.memory_space<vmem>>, vector<1x8x8xbf16>,
      %121 = vector.extract_strided_slice %116 {offsets = [0, 32], sizes = [8, 8], strides = [1, 1]} : vector<8x64xbf16> to vector<8x8xbf16>
      %c0_72 = arith.constant 0 : index
      %c0_73 = arith.constant 0 : index
      %c0_74 = arith.constant 0 : index
      %122 = vector.load %arg9[%c0_72, %c0_73, %c0_74] : memref<4x8x8xbf16, #tpu.memory_space<vmem>>, vector<1x8x8xbf16>
      %123 = vector.shape_cast %122 : vector<1x8x8xbf16> to vector<8x8xbf16>
      %124 = vector.shape_cast %121 : vector<8x8xbf16> to vector<1x8x8xbf16>
      tpu.vector_store %arg9[%c0_72, %c0_73, %c0_74], %124 {strides = array<i32>} : memref<4x8x8xbf16, #tpu.memory_space<vmem>>, vector<1x8x8xbf16>,
      %125 = vector.extract_strided_slice %116 {offsets = [0, 8], sizes = [8, 8], strides = [1, 1]} : vector<8x64xbf16> to vector<8x8xbf16>
      %c1_75 = arith.constant 1 : index
      %c0_76 = arith.constant 0 : index
      %c0_77 = arith.constant 0 : index
      %126 = vector.load %arg8[%c1_75, %c0_76, %c0_77] : memref<4x8x8xbf16, #tpu.memory_space<vmem>>, vector<1x8x8xbf16>
      %127 = vector.shape_cast %126 : vector<1x8x8xbf16> to vector<8x8xbf16>
      %128 = vector.shape_cast %125 : vector<8x8xbf16> to vector<1x8x8xbf16>
      tpu.vector_store %arg8[%c1_75, %c0_76, %c0_77], %128 {strides = array<i32>} : memref<4x8x8xbf16, #tpu.memory_space<vmem>>, vector<1x8x8xbf16>,
      %129 = vector.extract_strided_slice %116 {offsets = [0, 40], sizes = [8, 8], strides = [1, 1]} : vector<8x64xbf16> to vector<8x8xbf16>
      %c1_78 = arith.constant 1 : index
      %c0_79 = arith.constant 0 : index
      %c0_80 = arith.constant 0 : index
      %130 = vector.load %arg9[%c1_78, %c0_79, %c0_80] : memref<4x8x8xbf16, #tpu.memory_space<vmem>>, vector<1x8x8xbf16>
      %131 = vector.shape_cast %130 : vector<1x8x8xbf16> to vector<8x8xbf16>
      %132 = vector.shape_cast %129 : vector<8x8xbf16> to vector<1x8x8xbf16>
      tpu.vector_store %arg9[%c1_78, %c0_79, %c0_80], %132 {strides = array<i32>} : memref<4x8x8xbf16, #tpu.memory_space<vmem>>, vector<1x8x8xbf16>,
      %133 = vector.extract_strided_slice %116 {offsets = [0, 16], sizes = [8, 8], strides = [1, 1]} : vector<8x64xbf16> to vector<8x8xbf16>
      %c2_81 = arith.constant 2 : index
      %c0_82 = arith.constant 0 : index
      %c0_83 = arith.constant 0 : index
      %134 = vector.load %arg8[%c2_81, %c0_82, %c0_83] : memref<4x8x8xbf16, #tpu.memory_space<vmem>>, vector<1x8x8xbf16>
      %135 = vector.shape_cast %134 : vector<1x8x8xbf16> to vector<8x8xbf16>
      %136 = vector.shape_cast %133 : vector<8x8xbf16> to vector<1x8x8xbf16>
      tpu.vector_store %arg8[%c2_81, %c0_82, %c0_83], %136 {strides = array<i32>} : memref<4x8x8xbf16, #tpu.memory_space<vmem>>, vector<1x8x8xbf16>,
      %137 = vector.extract_strided_slice %116 {offsets = [0, 48], sizes = [8, 8], strides = [1, 1]} : vector<8x64xbf16> to vector<8x8xbf16>
      %c2_84 = arith.constant 2 : index
      %c0_85 = arith.constant 0 : index
      %c0_86 = arith.constant 0 : index
      %138 = vector.load %arg9[%c2_84, %c0_85, %c0_86] : memref<4x8x8xbf16, #tpu.memory_space<vmem>>, vector<1x8x8xbf16>
      %139 = vector.shape_cast %138 : vector<1x8x8xbf16> to vector<8x8xbf16>
      %140 = vector.shape_cast %137 : vector<8x8xbf16> to vector<1x8x8xbf16>
      tpu.vector_store %arg9[%c2_84, %c0_85, %c0_86], %140 {strides = array<i32>} : memref<4x8x8xbf16, #tpu.memory_space<vmem>>, vector<1x8x8xbf16>,
      %141 = vector.extract_strided_slice %116 {offsets = [0, 24], sizes = [8, 8], strides = [1, 1]} : vector<8x64xbf16> to vector<8x8xbf16>
      %c3_87 = arith.constant 3 : index
      %c0_88 = arith.constant 0 : index
      %c0_89 = arith.constant 0 : index
      %142 = vector.load %arg8[%c3_87, %c0_88, %c0_89] : memref<4x8x8xbf16, #tpu.memory_space<vmem>>, vector<1x8x8xbf16>
      %143 = vector.shape_cast %142 : vector<1x8x8xbf16> to vector<8x8xbf16>
      %144 = vector.shape_cast %141 : vector<8x8xbf16> to vector<1x8x8xbf16>
      tpu.vector_store %arg8[%c3_87, %c0_88, %c0_89], %144 {strides = array<i32>} : memref<4x8x8xbf16, #tpu.memory_space<vmem>>, vector<1x8x8xbf16>,
      %145 = vector.extract_strided_slice %116 {offsets = [0, 56], sizes = [8, 8], strides = [1, 1]} : vector<8x64xbf16> to vector<8x8xbf16>
      %c3_90 = arith.constant 3 : index
      %c0_91 = arith.constant 0 : index
      %c0_92 = arith.constant 0 : index
      %146 = vector.load %arg9[%c3_90, %c0_91, %c0_92] : memref<4x8x8xbf16, #tpu.memory_space<vmem>>, vector<1x8x8xbf16>
      %147 = vector.shape_cast %146 : vector<1x8x8xbf16> to vector<8x8xbf16>
      %148 = vector.shape_cast %145 : vector<8x8xbf16> to vector<1x8x8xbf16>
      tpu.vector_store %arg9[%c3_90, %c0_91, %c0_92], %148 {strides = array<i32>} : memref<4x8x8xbf16, #tpu.memory_space<vmem>>, vector<1x8x8xbf16>,
    } else {
    }
    %c8_i32 = arith.constant 8 : i32
    %3 = arith.muli %arg1, %c8_i32 : i32
    %4 = tpu.assume_multiple %3, 8 : i32
    %c0 = arith.constant 0 : index
    %5 = arith.index_cast %4 : i32 to index
    %c0_1 = arith.constant 0 : index
    %6 = vector.load %arg2[%c0, %5, %c0_1] : memref<1x8x32xf32, #tpu.memory_space<vmem>>, vector<1x8x32xf32>
    %7 = vector.shape_cast %6 : vector<1x8x32xf32> to vector<8x32xf32>
    %8 = arith.truncf %7 : vector<8x32xf32> to vector<8x32xbf16>
    %c0_2 = arith.constant 0 : index
    %c0_3 = arith.constant 0 : index
    %9 = vector.load %arg3[%c0_2, %c0_3] : memref<32x32xbf16, #tpu.memory_space<vmem>>, vector<32x32xbf16>
    %cst = arith.constant dense<0.000000e+00> : vector<8x32xf32>
    %10 = tpu.matmul %8, %9, %cst {dimension_numbers = #tpu.dot_dimension_numbers<[1], [0], [0], [1], [0, 0, 1, 1], [], []>} : vector<8x32xbf16>, vector<32x32xbf16>, vector<8x32xf32> -> vector<8x32xf32>
    %11 = arith.truncf %10 : vector<8x32xf32> to vector<8x32xbf16>
    %cst_4 = arith.constant 0.000000e+00 : f32
    %12 = vector.broadcast %cst_4 : f32 to vector<8x32xf32>
    %13 = vector.extract_strided_slice %11 {offsets = [0, 0], sizes = [8, 8], strides = [1, 1]} : vector<8x32xbf16> to vector<8x8xbf16>
    %c0_5 = arith.constant 0 : index
    %c0_6 = arith.constant 0 : index
    %c0_7 = arith.constant 0 : index
    %14 = vector.load %arg8[%c0_5, %c0_6, %c0_7] : memref<4x8x8xbf16, #tpu.memory_space<vmem>>, vector<1x8x8xbf16>
    %15 = vector.shape_cast %14 : vector<1x8x8xbf16> to vector<8x8xbf16>
    %c0_8 = arith.constant 0 : index
    %c0_9 = arith.constant 0 : index
    %c0_10 = arith.constant 0 : index
    %16 = vector.load %arg9[%c0_8, %c0_9, %c0_10] : memref<4x8x8xbf16, #tpu.memory_space<vmem>>, vector<1x8x8xbf16>
    %17 = vector.shape_cast %16 : vector<1x8x8xbf16> to vector<8x8xbf16>
    %cst_11 = arith.constant dense<0.000000e+00> : vector<8x8xf32>
    %18 = tpu.matmul %13, %15, %cst_11 {dimension_numbers = #tpu.dot_dimension_numbers<[1], [1], [0], [0], [0, 0, 1, 0], [], []>} : vector<8x8xbf16>, vector<8x8xbf16>, vector<8x8xf32> -> vector<8x8xf32>
    %cst_12 = arith.constant dense<0xFF800000> : vector<8xf32>
    %19 = vector.multi_reduction <maximumf>, %18, %cst_12 [1] : vector<8x8xf32> to vector<8xf32>
    %20 = vector.shape_cast %19 : vector<8xf32> to vector<8x1xf32>
    %21 = vector.broadcast %20 : vector<8x1xf32> to vector<8x8xf32>
    %22 = arith.subf %18, %21 : vector<8x8xf32>
    %23 = math.exp %22 : vector<8x8xf32>
    %cst_13 = arith.constant dense<0.000000e+00> : vector<8xf32>
    %24 = vector.multi_reduction <add>, %23, %cst_13 [1] : vector<8x8xf32> to vector<8xf32>
    %25 = vector.shape_cast %24 : vector<8xf32> to vector<8x1xf32>
    %26 = tpu.reciprocal %25 {approx = true} : vector<8x1xf32> -> vector<8x1xf32>
    %27 = vector.broadcast %26 : vector<8x1xf32> to vector<8x8xf32>
    %28 = arith.mulf %23, %27 : vector<8x8xf32>
    %29 = arith.truncf %28 : vector<8x8xf32> to vector<8x8xbf16>
    %cst_14 = arith.constant dense<0.000000e+00> : vector<8x8xf32>
    %30 = tpu.matmul %29, %17, %cst_14 {dimension_numbers = #tpu.dot_dimension_numbers<[1], [0], [0], [1], [0, 0, 1, 1], [], []>} : vector<8x8xbf16>, vector<8x8xbf16>, vector<8x8xf32> -> vector<8x8xf32>
    %31 = arith.truncf %30 : vector<8x8xf32> to vector<8x8xbf16>
    %c0_15 = arith.constant 0 : index
    %c0_16 = arith.constant 0 : index
    %c0_17 = arith.constant 0 : index
    %32 = vector.load %arg5[%c0_15, %c0_16, %c0_17] : memref<4x8x32xbf16, #tpu.memory_space<vmem>>, vector<1x8x32xbf16>
    %33 = vector.shape_cast %32 : vector<1x8x32xbf16> to vector<8x32xbf16>
    %cst_18 = arith.constant dense<0.000000e+00> : vector<8x32xf32>
    %34 = tpu.matmul %31, %33, %cst_18 {dimension_numbers = #tpu.dot_dimension_numbers<[1], [0], [0], [1], [0, 0, 1, 1], [], []>} : vector<8x8xbf16>, vector<8x32xbf16>, vector<8x32xf32> -> vector<8x32xf32>
    %35 = arith.addf %12, %34 : vector<8x32xf32>
    %36 = vector.extract_strided_slice %11 {offsets = [0, 8], sizes = [8, 8], strides = [1, 1]} : vector<8x32xbf16> to vector<8x8xbf16>
    %c1 = arith.constant 1 : index
    %c0_19 = arith.constant 0 : index
    %c0_20 = arith.constant 0 : index
    %37 = vector.load %arg8[%c1, %c0_19, %c0_20] : memref<4x8x8xbf16, #tpu.memory_space<vmem>>, vector<1x8x8xbf16>
    %38 = vector.shape_cast %37 : vector<1x8x8xbf16> to vector<8x8xbf16>
    %c1_21 = arith.constant 1 : index
    %c0_22 = arith.constant 0 : index
    %c0_23 = arith.constant 0 : index
    %39 = vector.load %arg9[%c1_21, %c0_22, %c0_23] : memref<4x8x8xbf16, #tpu.memory_space<vmem>>, vector<1x8x8xbf16>
    %40 = vector.shape_cast %39 : vector<1x8x8xbf16> to vector<8x8xbf16>
    %cst_24 = arith.constant dense<0.000000e+00> : vector<8x8xf32>
    %41 = tpu.matmul %36, %38, %cst_24 {dimension_numbers = #tpu.dot_dimension_numbers<[1], [1], [0], [0], [0, 0, 1, 0], [], []>} : vector<8x8xbf16>, vector<8x8xbf16>, vector<8x8xf32> -> vector<8x8xf32>
    %cst_25 = arith.constant dense<0xFF800000> : vector<8xf32>
    %42 = vector.multi_reduction <maximumf>, %41, %cst_25 [1] : vector<8x8xf32> to vector<8xf32>
    %43 = vector.shape_cast %42 : vector<8xf32> to vector<8x1xf32>
    %44 = vector.broadcast %43 : vector<8x1xf32> to vector<8x8xf32>
    %45 = arith.subf %41, %44 : vector<8x8xf32>
    %46 = math.exp %45 : vector<8x8xf32>
    %cst_26 = arith.constant dense<0.000000e+00> : vector<8xf32>
    %47 = vector.multi_reduction <add>, %46, %cst_26 [1] : vector<8x8xf32> to vector<8xf32>
    %48 = vector.shape_cast %47 : vector<8xf32> to vector<8x1xf32>
    %49 = tpu.reciprocal %48 {approx = true} : vector<8x1xf32> -> vector<8x1xf32>
    %50 = vector.broadcast %49 : vector<8x1xf32> to vector<8x8xf32>
    %51 = arith.mulf %46, %50 : vector<8x8xf32>
    %52 = arith.truncf %51 : vector<8x8xf32> to vector<8x8xbf16>
    %cst_27 = arith.constant dense<0.000000e+00> : vector<8x8xf32>
    %53 = tpu.matmul %52, %40, %cst_27 {dimension_numbers = #tpu.dot_dimension_numbers<[1], [0], [0], [1], [0, 0, 1, 1], [], []>} : vector<8x8xbf16>, vector<8x8xbf16>, vector<8x8xf32> -> vector<8x8xf32>
    %54 = arith.truncf %53 : vector<8x8xf32> to vector<8x8xbf16>
    %c1_28 = arith.constant 1 : index
    %c0_29 = arith.constant 0 : index
    %c0_30 = arith.constant 0 : index
    %55 = vector.load %arg5[%c1_28, %c0_29, %c0_30] : memref<4x8x32xbf16, #tpu.memory_space<vmem>>, vector<1x8x32xbf16>
    %56 = vector.shape_cast %55 : vector<1x8x32xbf16> to vector<8x32xbf16>
    %cst_31 = arith.constant dense<0.000000e+00> : vector<8x32xf32>
    %57 = tpu.matmul %54, %56, %cst_31 {dimension_numbers = #tpu.dot_dimension_numbers<[1], [0], [0], [1], [0, 0, 1, 1], [], []>} : vector<8x8xbf16>, vector<8x32xbf16>, vector<8x32xf32> -> vector<8x32xf32>
    %58 = arith.addf %35, %57 : vector<8x32xf32>
    %59 = vector.extract_strided_slice %11 {offsets = [0, 16], sizes = [8, 8], strides = [1, 1]} : vector<8x32xbf16> to vector<8x8xbf16>
    %c2 = arith.constant 2 : index
    %c0_32 = arith.constant 0 : index
    %c0_33 = arith.constant 0 : index
    %60 = vector.load %arg8[%c2, %c0_32, %c0_33] : memref<4x8x8xbf16, #tpu.memory_space<vmem>>, vector<1x8x8xbf16>
    %61 = vector.shape_cast %60 : vector<1x8x8xbf16> to vector<8x8xbf16>
    %c2_34 = arith.constant 2 : index
    %c0_35 = arith.constant 0 : index
    %c0_36 = arith.constant 0 : index
    %62 = vector.load %arg9[%c2_34, %c0_35, %c0_36] : memref<4x8x8xbf16, #tpu.memory_space<vmem>>, vector<1x8x8xbf16>
    %63 = vector.shape_cast %62 : vector<1x8x8xbf16> to vector<8x8xbf16>
    %cst_37 = arith.constant dense<0.000000e+00> : vector<8x8xf32>
    %64 = tpu.matmul %59, %61, %cst_37 {dimension_numbers = #tpu.dot_dimension_numbers<[1], [1], [0], [0], [0, 0, 1, 0], [], []>} : vector<8x8xbf16>, vector<8x8xbf16>, vector<8x8xf32> -> vector<8x8xf32>
    %cst_38 = arith.constant dense<0xFF800000> : vector<8xf32>
    %65 = vector.multi_reduction <maximumf>, %64, %cst_38 [1] : vector<8x8xf32> to vector<8xf32>
    %66 = vector.shape_cast %65 : vector<8xf32> to vector<8x1xf32>
    %67 = vector.broadcast %66 : vector<8x1xf32> to vector<8x8xf32>
    %68 = arith.subf %64, %67 : vector<8x8xf32>
    %69 = math.exp %68 : vector<8x8xf32>
    %cst_39 = arith.constant dense<0.000000e+00> : vector<8xf32>
    %70 = vector.multi_reduction <add>, %69, %cst_39 [1] : vector<8x8xf32> to vector<8xf32>
    %71 = vector.shape_cast %70 : vector<8xf32> to vector<8x1xf32>
    %72 = tpu.reciprocal %71 {approx = true} : vector<8x1xf32> -> vector<8x1xf32>
    %73 = vector.broadcast %72 : vector<8x1xf32> to vector<8x8xf32>
    %74 = arith.mulf %69, %73 : vector<8x8xf32>
    %75 = arith.truncf %74 : vector<8x8xf32> to vector<8x8xbf16>
    %cst_40 = arith.constant dense<0.000000e+00> : vector<8x8xf32>
    %76 = tpu.matmul %75, %63, %cst_40 {dimension_numbers = #tpu.dot_dimension_numbers<[1], [0], [0], [1], [0, 0, 1, 1], [], []>} : vector<8x8xbf16>, vector<8x8xbf16>, vector<8x8xf32> -> vector<8x8xf32>
    %77 = arith.truncf %76 : vector<8x8xf32> to vector<8x8xbf16>
    %c2_41 = arith.constant 2 : index
    %c0_42 = arith.constant 0 : index
    %c0_43 = arith.constant 0 : index
    %78 = vector.load %arg5[%c2_41, %c0_42, %c0_43] : memref<4x8x32xbf16, #tpu.memory_space<vmem>>, vector<1x8x32xbf16>
    %79 = vector.shape_cast %78 : vector<1x8x32xbf16> to vector<8x32xbf16>
    %cst_44 = arith.constant dense<0.000000e+00> : vector<8x32xf32>
    %80 = tpu.matmul %77, %79, %cst_44 {dimension_numbers = #tpu.dot_dimension_numbers<[1], [0], [0], [1], [0, 0, 1, 1], [], []>} : vector<8x8xbf16>, vector<8x32xbf16>, vector<8x32xf32> -> vector<8x32xf32>
    %81 = arith.addf %58, %80 : vector<8x32xf32>
    %82 = vector.extract_strided_slice %11 {offsets = [0, 24], sizes = [8, 8], strides = [1, 1]} : vector<8x32xbf16> to vector<8x8xbf16>
    %c3 = arith.constant 3 : index
    %c0_45 = arith.constant 0 : index
    %c0_46 = arith.constant 0 : index
    %83 = vector.load %arg8[%c3, %c0_45, %c0_46] : memref<4x8x8xbf16, #tpu.memory_space<vmem>>, vector<1x8x8xbf16>
    %84 = vector.shape_cast %83 : vector<1x8x8xbf16> to vector<8x8xbf16>
    %c3_47 = arith.constant 3 : index
    %c0_48 = arith.constant 0 : index
    %c0_49 = arith.constant 0 : index
    %85 = vector.load %arg9[%c3_47, %c0_48, %c0_49] : memref<4x8x8xbf16, #tpu.memory_space<vmem>>, vector<1x8x8xbf16>
    %86 = vector.shape_cast %85 : vector<1x8x8xbf16> to vector<8x8xbf16>
    %cst_50 = arith.constant dense<0.000000e+00> : vector<8x8xf32>
    %87 = tpu.matmul %82, %84, %cst_50 {dimension_numbers = #tpu.dot_dimension_numbers<[1], [1], [0], [0], [0, 0, 1, 0], [], []>} : vector<8x8xbf16>, vector<8x8xbf16>, vector<8x8xf32> -> vector<8x8xf32>
    %cst_51 = arith.constant dense<0xFF800000> : vector<8xf32>
    %88 = vector.multi_reduction <maximumf>, %87, %cst_51 [1] : vector<8x8xf32> to vector<8xf32>
    %89 = vector.shape_cast %88 : vector<8xf32> to vector<8x1xf32>
    %90 = vector.broadcast %89 : vector<8x1xf32> to vector<8x8xf32>
    %91 = arith.subf %87, %90 : vector<8x8xf32>
    %92 = math.exp %91 : vector<8x8xf32>
    %cst_52 = arith.constant dense<0.000000e+00> : vector<8xf32>
    %93 = vector.multi_reduction <add>, %92, %cst_52 [1] : vector<8x8xf32> to vector<8xf32>
    %94 = vector.shape_cast %93 : vector<8xf32> to vector<8x1xf32>
    %95 = tpu.reciprocal %94 {approx = true} : vector<8x1xf32> -> vector<8x1xf32>
    %96 = vector.broadcast %95 : vector<8x1xf32> to vector<8x8xf32>
    %97 = arith.mulf %92, %96 : vector<8x8xf32>
    %98 = arith.truncf %97 : vector<8x8xf32> to vector<8x8xbf16>
    %cst_53 = arith.constant dense<0.000000e+00> : vector<8x8xf32>
    %99 = tpu.matmul %98, %86, %cst_53 {dimension_numbers = #tpu.dot_dimension_numbers<[1], [0], [0], [1], [0, 0, 1, 1], [], []>} : vector<8x8xbf16>, vector<8x8xbf16>, vector<8x8xf32> -> vector<8x8xf32>
    %100 = arith.truncf %99 : vector<8x8xf32> to vector<8x8xbf16>
    %c3_54 = arith.constant 3 : index
    %c0_55 = arith.constant 0 : index
    %c0_56 = arith.constant 0 : index
    %101 = vector.load %arg5[%c3_54, %c0_55, %c0_56] : memref<4x8x32xbf16, #tpu.memory_space<vmem>>, vector<1x8x32xbf16>
    %102 = vector.shape_cast %101 : vector<1x8x32xbf16> to vector<8x32xbf16>
    %cst_57 = arith.constant dense<0.000000e+00> : vector<8x32xf32>
    %103 = tpu.matmul %100, %102, %cst_57 {dimension_numbers = #tpu.dot_dimension_numbers<[1], [0], [0], [1], [0, 0, 1, 1], [], []>} : vector<8x8xbf16>, vector<8x32xbf16>, vector<8x32xf32> -> vector<8x32xf32>
    %104 = arith.addf %81, %103 : vector<8x32xf32>
    %c0_58 = arith.constant 0 : index
    %c0_59 = arith.constant 0 : index
    %105 = vector.load %arg6[%c0_58, %c0_59] : memref<1x32xf32, #tpu.memory_space<vmem>>, vector<1x32xf32>
    %106 = vector.broadcast %105 : vector<1x32xf32> to vector<8x32xf32>
    %107 = arith.addf %104, %106 : vector<8x32xf32>
    %c0_60 = arith.constant 0 : index
    %c0_61 = arith.constant 0 : index
    %c0_62 = arith.constant 0 : index
    %108 = vector.load %arg7[%c0_60, %c0_61, %c0_62] : memref<1x8x32xf32, #tpu.memory_space<vmem>>, vector<1x8x32xf32>
    %109 = vector.shape_cast %108 : vector<1x8x32xf32> to vector<8x32xf32>
    %110 = vector.shape_cast %107 : vector<8x32xf32> to vector<1x8x32xf32>
    tpu.vector_store %arg7[%c0_60, %c0_61, %c0_62], %110 {strides = array<i32>} : memref<1x8x32xf32, #tpu.memory_space<vmem>>, vector<1x8x32xf32>,
    return
  }
  func.func @transform_0(%arg0: i32, %arg1: i32) -> (i32, i32, i32) {
    %c0_i32 = arith.constant 0 : i32
    %c0_i32_0 = arith.constant 0 : i32
    %c0_i32_1 = arith.constant 0 : i32
    return %arg0, %c0_i32, %c0_i32_0 : i32, i32, i32
  }
  func.func @transform_1(%arg0: i32, %arg1: i32) -> (i32, i32) {
    %c0_i32 = arith.constant 0 : i32
    %c0_i32_0 = arith.constant 0 : i32
    %c0_i32_1 = arith.constant 0 : i32
    return %c0_i32, %c0_i32_0 : i32, i32
  }
  func.func @transform_2(%arg0: i32, %arg1: i32) -> (i32, i32) {
    %c0_i32 = arith.constant 0 : i32
    %c0_i32_0 = arith.constant 0 : i32
    %c0_i32_1 = arith.constant 0 : i32
    return %c0_i32, %c0_i32_0 : i32, i32
  }
  func.func @transform_3(%arg0: i32, %arg1: i32) -> (i32, i32, i32) {
    %c0_i32 = arith.constant 0 : i32
    %c0_i32_0 = arith.constant 0 : i32
    %c0_i32_1 = arith.constant 0 : i32
    %c0_i32_2 = arith.constant 0 : i32
    return %c0_i32, %c0_i32_0, %c0_i32_1 : i32, i32, i32
  }
  func.func @transform_4(%arg0: i32, %arg1: i32) -> (i32, i32) {
    %c0_i32 = arith.constant 0 : i32
    %c0_i32_0 = arith.constant 0 : i32
    %c0_i32_1 = arith.constant 0 : i32
    return %c0_i32, %c0_i32_0 : i32, i32
  }
  func.func @transform_5(%arg0: i32, %arg1: i32) -> (i32, i32, i32) {
    %c0_i32 = arith.constant 0 : i32
    %c0_i32_0 = arith.constant 0 : i32
    return %arg0, %arg1, %c0_i32 : i32, i32, i32
  }
}

</mosaic_0001>

<bundles_post_ra>
// kernel: tpu_custom_call.1
= control target key start
LH: loop header
LB: loop body
LE: loop exit
PB: predicated region body
PF: predicated region fallthrough
CT: control target
= control target key end

     0   :  { %10 = vsyncpa [#allocation5], 0  ;;  %s2250_s0 = inlined_call_operand.hbm [shape: f32[2,8,32], index: 0, kind: input, shape index: {}]   ;;  %s2251_s1 = inlined_call_operand.hbm [shape: bf16[32,32], index: 1, kind: input, shape index: {}]   ;;  %s2252_s2 = inlined_call_operand.hbm [shape: bf16[32,64], index: 2, kind: input, shape index: {}]   ;;  %s2253_s3 = inlined_call_operand.hbm [shape: bf16[4,8,32], index: 3, kind: input, shape index: {}]   ;;  %s2254_s4 = inlined_call_operand.hbm [shape: f32[1,32], index: 4, kind: input, shape index: {}]   ;;  %s2255_s5 = inlined_call_operand.hbm [shape: f32[2,8,32], index: 5, kind: output, shape index: {}]  }
   0x1   :  { %12 = vsyncpa [#allocation5 + $0x1], 0 }
   0x2   :  { %13 = vsyncpa [#allocation8], 0 }
   0x3   :  { %14 = vsyncpa [#allocation11], 0 }
   0x4   :  { %15 = vsyncpa [#allocation6], 0 }
   0x5   :  { %17 = vsyncpa [#allocation6 + $0x1], 0  ;;  %s1836_s18 = smov 0   ;;  %s1838_s19 = smov 0  }
   0x6   :  { %s1840_s20 = smov 0   ;;  %s1842_s21 = smov 0  }
   0x7   :  { %s1844_s22 = smov 0   ;;  %s1846_s23 = smov 0  }
   0x8 LB: > { %s1261_s24 = sadd.s32 4294967295, %s1787_s23   ;;  %p1263_p0 = scmp.ge.s32.totalorder %s1787_s23, 1  ;;  %s1787_s23 = sphi %s1846_s23, %s23_s23   ;;  %s1783_s22 = sphi %s1844_s22, %s2279_s22   ;;  %s1779_s21 = sphi %s1842_s21, %s2278_s21   ;;  %s1775_s20 = sphi %s1840_s20, %s2277_s20   ;;  %s1771_s19 = sphi %s1838_s19, %s2276_s19   ;;  %s1767_s18 = sphi %s1836_s18, %s2275_s18  }
   0x9   : > { %p1870_p1 = scmp.eq.s32.totalorder %s1261_s24, 0  ;;  %p178_p2 = scmp.lt.s32.totalorder %s1787_s23, 3 }
   0xa   : > { %s1789_s27 = smov [#allocation7]   ;;  %s1790_s30 = smov [#allocation10]  }
   0xb   : > { %s2260_s25 = scalar_select %p1870_p1, 1, 0 }
   0xc   : > { %p1875_p3 = pnand %p1263_p0, %p178_p2  ;;  %s190_s28 = sshll.u32 %s1789_s27, 4  ;;  %s1879_s28 = int_to_ptr.vmem [resolvable:$true] %s190_s28 }
   0xd   : > { %s216_s6 = sshll.u32 %s1790_s30, 4  ;;  %s1791_s7 = smov [#allocation9]   ;;  %s1890_s6 = int_to_ptr.vmem [resolvable:$true] %s216_s6 }
   0xe   : > { %s2261_s26 = scalar_select %p1875_p3, 1, 0 }
   0xf   : > { %p1441_p4 = pneg %p1875_p3  ;;  %s1892_s8 = sshll.u32 %s1791_s7, 4  ;;  %s204_s8 = int_to_ptr.vmem [resolvable:$true] %s1892_s8 }
  0x10   : > { %s1555_s11 = scalar_lea.hbm %s2251_s1, 256 }
  0x11   : > { %p1886_p6 = pnand %p1441_p4, %p1870_p1  ;;  %p1556_p7 = scmp.ne.s32.totalorder %s2251_s1, %s1555_s11 }
  0x12   : > { %p1562_p11 = scmp.lt.u32.totalorder %s1555_s11, %s2251_s1 }
  0x13   : > { %p1902_p8 = pneg %p1886_p6 }
  0x15   : > { %p1558_p9 = pnand %p1902_p8, %p1556_p7 }
  0x17   : > { %p1559_p10 = pneg %p1558_p9 }
  0x19   : > { %p1564_p12 = pnand %p1562_p11, %p1559_p10 }
  0x1b   : > { %1567 = shalt.err (!%p1564_p12)
}
  0x1c   : > { %s1568_s17 = scalar_lea.vmem %s1879_s28, 256  ;;  %p1576_p4 = scmp.lt.s32.totalorder %s1879_s28, %s1879_s28 }
  0x1d   : > { %p1569_p13 = scmp.ne.s32.totalorder %s1879_s28, %s1568_s17  ;;  %p1577_p5 = scmp.lt.s32.totalorder %s1568_s17, %s1568_s17 }
  0x1f   : > { %p1571_p0 = pnand %p1569_p13, %p1902_p8  ;;  %p1578_p7 = por %p1577_p5, %p1576_p4 }
  0x21   : > { %p1572_p2 = pneg %p1571_p0 }
  0x23   : > { %p1579_p9 = pnand %p1578_p7, %p1572_p2 }
  0x25   : > { %1582 = shalt.err (!%p1579_p9)
}
  0x26   : > { %s1792_s27 = smov 64   ;;  %s1793_s30 = smov 4  }
  0x27   : > { %1444 = dma.hbm_to_vmem [thread:$0]  (!%p1886_p6), %s2251_s1, 256, %s1879_s28, [#allocation8], %s1792_s27, %s1792_s27, %s1793_s30  }
  0x28   : > { %s1583_s12 = scalar_lea.hbm %s2253_s3, 256 }
  0x29   : > { %p1584_p5 = scmp.ne.s32.totalorder %s2253_s3, %s1583_s12  ;;  %p1590_p12 = scmp.lt.u32.totalorder %s1583_s12, %s2253_s3 }
  0x2b   : > { %p1586_p10 = pnand %p1584_p5, %p1902_p8 }
  0x2d   : > { %p1587_p11 = pneg %p1586_p10 }
  0x2f   : > { %p1592_p13 = pnand %p1590_p12, %p1587_p11 }
  0x31   : > { %1595 = shalt.err (!%p1592_p13)
}
  0x32   : > { %s1596_s28 = scalar_lea.vmem %s1890_s6, 256  ;;  %p1604_p7 = scmp.lt.s32.totalorder %s1890_s6, %s1890_s6 }
  0x33   : > { %p1597_p0 = scmp.ne.s32.totalorder %s1890_s6, %s1596_s28  ;;  %p1605_p9 = scmp.lt.s32.totalorder %s1596_s28, %s1596_s28 }
  0x35   : > { %p1599_p2 = pnand %p1597_p0, %p1902_p8  ;;  %p1606_p5 = por %p1605_p9, %p1604_p7 }
  0x37   : > { %p1600_p4 = pneg %p1599_p2 }
  0x39   : > { %p1607_p10 = pnand %p1606_p5, %p1600_p4 }
  0x3b   : > { %1610 = shalt.err (!%p1607_p10)
}
  0x3c   : > { %1450 = dma.hbm_to_vmem [thread:$0]  (!%p1886_p6), %s2253_s3, 256, %s1890_s6, [#allocation11], %s1792_s27, %s1792_s27, %s1793_s30  }
  0x3d   : > { %s1611_s12 = scalar_lea.hbm %s2252_s2, 256 }
  0x3e   : > { %p1612_p11 = scmp.ne.s32.totalorder %s2252_s2, %s1611_s12  ;;  %p1618_p0 = scmp.lt.u32.totalorder %s1611_s12, %s2252_s2 }
  0x40   : > { %p1614_p12 = pnand %p1612_p11, %p1902_p8 }
  0x42   : > { %p1615_p13 = pneg %p1614_p12 }
  0x44   : > { %p1620_p2 = pnand %p1618_p0, %p1615_p13 }
  0x46   : > { %1623 = shalt.err (!%p1620_p2)
}
  0x47   : > { %s1624_s28 = scalar_lea.vmem %s204_s8, 256  ;;  %p1632_p5 = scmp.lt.s32.totalorder %s204_s8, %s204_s8 }
  0x48   : > { %p1625_p4 = scmp.ne.s32.totalorder %s204_s8, %s1624_s28  ;;  %p1633_p10 = scmp.lt.s32.totalorder %s1624_s28, %s1624_s28 }
  0x4a   : > { %p1627_p7 = pnand %p1625_p4, %p1902_p8  ;;  %p1634_p3 = por %p1633_p10, %p1632_p5 }
  0x4c   : > { %p1628_p9 = pneg %p1627_p7 }
  0x4e   : > { %p1635_p1 = pnand %p1634_p3, %p1628_p9 }
  0x50   : > { %1638 = shalt.err (!%p1635_p1)
}
  0x51   : > { %1447 = dma.hbm_to_vmem [thread:$0]  (!%p1886_p6), %s2252_s2, 256, %s204_s8, [#allocation8], %s1792_s27, %s1792_s27, %s1793_s30  }
  0x52   : > { %s1794_s9 = smov [#allocation12]   ;;  %s1639_s13 = scalar_lea.hbm %s2254_s4, 16 }
  0x53   : > { %s230_s10 = sshll.u32 %s1794_s9, 4  ;;  %p1640_p1 = scmp.ne.s32.totalorder %s2254_s4, %s1639_s13  ;;  %s231_s10 = int_to_ptr.vmem [resolvable:$true] %s230_s10 }
  0x54   : > { %p1646_p12 = scmp.lt.u32.totalorder %s1639_s13, %s2254_s4 }
  0x55   : > { %p1642_p3 = pnand %p1640_p1, %p1902_p8 }
  0x57   : > { %p1643_p11 = pneg %p1642_p3 }
  0x59   : > { %p1648_p13 = pnand %p1646_p12, %p1643_p11 }
  0x5b   : > { %1651 = shalt.err (!%p1648_p13)
}
  0x5c   : > { %s1652_s8 = scalar_lea.vmem %s231_s10, 16  ;;  %s1659_s27 = scalar_lea.vmem %s231_s10, 32 }
  0x5d   : > { %p1653_p0 = scmp.ne.s32.totalorder %s231_s10, %s1652_s8  ;;  %p1660_p7 = scmp.lt.s32.totalorder %s231_s10, %s231_s10 }
  0x5e   : > { %p1661_p9 = scmp.lt.s32.totalorder %s1659_s27, %s1652_s8 }
  0x5f   : > { %p1655_p2 = pnand %p1653_p0, %p1902_p8 }
  0x60   : > { %p1662_p5 = por %p1661_p9, %p1660_p7 }
  0x61   : > { %p1656_p4 = pneg %p1655_p2 }
  0x63   : > { %p1663_p10 = pnand %p1662_p5, %p1656_p4 }
  0x65   : > { %1666 = shalt.err (!%p1663_p10)
}
  0x66   : > { %1453 = dma.hbm_to_vmem [thread:$0]  (!%p1886_p6), %s2254_s4, 16, %s231_s10, [#allocation11]  }
  0x67   : > { %s1262_s14 = sadd.s32 4294967294, %s1787_s23   ;;  %s35_s7 = sadd.s32 1, %s1783_s22 }
  0x68   : > { %p37_p8 = scmp.ge.s32.totalorder %s35_s7, 2  ;;  %s42_s29 = sadd.s32 1, %s1775_s20 }
  0x69   : > { %p49_p1 = scmp.ne.s32.totalorder %s1775_s20, %s1771_s19  ;;  %p50_p3 = scmp.eq.s32.totalorder %s1787_s23, 0 }
  0x6a   : > { %s2281_s7 = smov (%p37_p8, %s35_s7), 0  ;;  %p55_p12 = scmp.ne.s32.totalorder %s1771_s19, %s1767_s18 }
  0x6b   : > { %p2000_p11 = por %p50_p3, %p49_p1  ;;  %s39_s10 = ssub.s32 %s1783_s22, %s2281_s7 }
  0x6c   : > { %p165_p6 = scmp.eq.s32.totalorder %s1261_s24, 1  ;;  %p40_p13 = scmp.eq.s32.totalorder %s39_s10, 0 }
  0x6d   : > { %p2265_p0 = scmp.ne.s32.totalorder %s2260_s25, 0  ;;  %p171_p7 = scmp.eq.s32.totalorder %s1262_s14, 1 }
  0x6e   : > { %p2016_p4 = por %p165_p6, %p49_p1  ;;  %p1466_p5 = scmp.lt.s32.totalorder %s1787_s23, 2 }
  0x6f   : > { %p2012_p2 = por %p2265_p0, %p55_p12  ;;  %p2023_p9 = por %p171_p7, %p55_p12 }
  0x70   : > { %s2267_s12 = scalar_select %p2016_p4, 1, 0 }
  0x71   : > { %s2021_s13 = scalar_select %p40_p13, %s1775_s20, %s42_s29  }
  0x72   : > { %s2268_s15 = scalar_select %p2023_p9, 1, 0 }
  0x73   : > { %s241_s16 = sand.u32 1, %s1775_s20   ;;  %s1270_s24 = sshll.u32 %s1783_s22, 7 }
  0x74   : > { %s1269_s17 = sshll.u32 %s241_s16, 3  ;;  %s2033_s27 = scalar_lea.hbm %s2250_s0, %s1270_s24 }
  0x75   : > { %s245_s30 = scalar_lea.vmem [#allocation4], %s1269_s17  ;;  %p2037_p10 = pnand %p1466_p5, %p2000_p11 }
  0x76   : > { %s252_s6 = sshll.u32 %s245_s30, 4  ;;  %s242_s29 = scalar_lea.sflag [#allocation5], %s241_s16  ;;  %s2041_s6 = int_to_ptr.vmem [resolvable:$true] %s252_s6 }
  0x77   : > { %s1667_s10 = scalar_lea.hbm %s2033_s27, 128  ;;  %p1669_p1 = pneg %p2037_p10 }
  0x78   : > { %p1668_p8 = scmp.ne.s32.totalorder %s2033_s27, %s1667_s10  ;;  %s1672_s9 = scalar_lea.hbm %s2250_s0, 256 }
  0x79   : > { %p1673_p11 = scmp.lt.u32.totalorder %s2033_s27, %s2250_s0  ;;  %p1674_p6 = scmp.lt.u32.totalorder %s1672_s9, %s1667_s10 }
  0x7a   : > { %p1670_p3 = pnand %p1669_p1, %p1668_p8  ;;  %p1676_p0 = scmp.lt.u32.totalorder %s1667_s10, %s2033_s27 }
  0x7b   : > { %p1675_p13 = por %p1674_p6, %p1673_p11 }
  0x7c   : > { %p1671_p12 = pneg %p1670_p3 }
  0x7d   : > { %p1677_p7 = por %p1676_p0, %p1675_p13 }
  0x7f   : > { %p1678_p5 = pnand %p1677_p7, %p1671_p12 }
  0x81   : > { %1681 = shalt.err (!%p1678_p5)
}
  0x82   : > { %s1682_s16 = scalar_lea.vmem %s2041_s6, 128  ;;  %s1795_s30 = smov [#allocation4]  }
  0x83   : > { %p1683_p8 = scmp.ne.s32.totalorder %s2041_s6, %s1682_s16  ;;  %s1687_s24 = sshll.u32 %s1795_s30, 4  ;;  %s1688_s24 = int_to_ptr.vmem [resolvable:$false] %s1687_s24 }
  0x84   : > { %s1689_s17 = scalar_lea.vmem %s1688_s24, 256  ;;  %p1690_p4 = scmp.lt.s32.totalorder %s2041_s6, %s1688_s24 }
  0x85   : > { %p1685_p3 = pnand %p1683_p8, %p1669_p1  ;;  %p1691_p11 = scmp.lt.s32.totalorder %s1689_s17, %s1682_s16 }
  0x87   : > { %p1686_p9 = pneg %p1685_p3  ;;  %p1692_p6 = por %p1691_p11, %p1690_p4 }
  0x89   : > { %p1693_p13 = pnand %p1692_p6, %p1686_p9 }
  0x8b   : > { %1696 = shalt.err (!%p1693_p13)
}
  0x8c   : > { %1457 = dma.hbm_to_vmem [thread:$0]  (!%p2037_p10), %s2033_s27, 128, %s2041_s6, %s242_s29  }
  0x8d   : > { %p2270_p12 = scmp.ne.s32.totalorder %s2261_s26, 0 }
  0x8e   : > { %s2071_s10 = sand.u32 (!%p2270_p12), 1, %s1771_s19  }
  0x8f   : > { %261 = sbr.rel (%p2270_p12) target bundleno = 2771 (0xad3), region = 40  ;;  %s1272_s9 = sshll.u32 (!%p2270_p12), %s2071_s10, 3 }
  0x90   : > { %s264_s28 = scalar_lea.sflag (!%p2270_p12), [#allocation5], %s2071_s10  ;;  %s267_s8 = scalar_lea.vmem (!%p2270_p12), [#allocation4], %s1272_s9 }
  0x96   : > { %1750 = dma.done.wait (%p2012_p2), %s264_s28, 128  }
  0x97   : > { %1752 = vsyncadd (%p2012_p2), %s264_s28, 4294967168  ;;  %p2271_p4 = scmp.ne.s32.totalorder %s2260_s25, 0 }
  0x99   : > { %1754 = dma.done.wait (%p2271_p4), [#allocation8], 512  }
  0x9a   : > { %1756 = vsyncadd (%p2271_p4), [#allocation8], 4294966784 }
  0x9b   : > { %1758 = dma.done.wait (%p2271_p4), [#allocation11], 272  }
  0x9c   : > { %1760 = vsyncadd (%p2271_p4), [#allocation11], 4294967024  ;;  %v1796_v0 = vmov 0.0   ;;  %vm1797_vm0 = vmmov 0   ;;  %v1535_v1 = vld [vmem:[#allocation9] sm:$0xff]   ;;  %v1536_v2 = vld [vmem:[#allocation9 + $0x8] sm:$0xff]  }
  0x9d   : > { %1333 = vmatprep.subr.bf16.mxu0 %v1796_v0  ;;  %1337 = vmatprep.mubr.msk.bf16.mxu0 %vm1797_vm0, %v1796_v0  ;;  %v315_v3 = vld [vmem:[%s267_s8] sm:$0xff]  ;;  %v1537_v4 = vld [vmem:[#allocation7] sm:$0xff]   ;;  %v1538_v6 = vld [vmem:[#allocation7 + $0x8] sm:$0xff]   ;;  %vm333_vm1 = vcmask 261120   ;;  %vm378_vm2 = vcmask 60416   ;;  %s1798_s25 = smov 120  }
  0x9e   : > { %1341 = vmatprep.subr.bf16.mxu1 %v1796_v0  ;;  %1345 = vmatprep.mubr.msk.bf16.mxu1 %vm1797_vm0, %v1796_v0  ;;  %v316_v5 = vpack.c.bf16 %v315_v3, %v315_v3  ;;  %vm484_vm3 = vcmask 64512   ;;  %s1799_s26 = smov 96   ;;  %vm546_vm4 = vcmask 1043456   ;;  %s1800_s11 = smov 88   ;;  %v705_v50 = vld [vmem:[#allocation10 + $0x4] sm:$0xf] }
  0x9f   : > { %1334 = vmatpush3.bf16.msra.mxu0 %v1535_v1  ;;  %1342 = vmatpush3.bf16.msra.mxu1 %v1537_v4  ;;  %s1801_s27 = smov 112   ;;  %v710_v51 = vsel %vm546_vm4, %v705_v50, 0  ;;  %v591_v58 = vld [vmem:[#allocation10] sm:$0xf]  ;;  %s1802_s6 = smov 80  }
  0xa0   : > { %1335 = vmatprep.subr.bf16.mxu0 %v1796_v0  ;;  %1343 = vmatprep.subr.bf16.mxu1 %v1796_v0  ;;  %v756_v61 = vsel %vm546_vm4, %v591_v58, 0  ;;  %s1803_s14 = smov 104   ;;  %s1804_s29 = smov 72  }
  0xa1   : > { %s1299_s16 = sshll.u32 %s1779_s21, 7  ;;  %s309_s30 = scalar_lea.vmem [#allocation13], %s1272_s9 }
  0xa2   : > { %s1142_s24 = sshll.u32 %s309_s30, 4  ;;  %s2200_s8 = scalar_lea.hbm %s2255_s5, %s1299_s16  ;;  %s2202_s24 = int_to_ptr.vmem [resolvable:$true] %s1142_s24 }
  0xa3   : > { %1336 = vmatpush3.bf16.msra.mxu0 %v1536_v2  ;;  %1344 = vmatpush3.bf16.msra.mxu1 %v1538_v6  ;;  %s1128_s21 = scalar_lea.sflag [#allocation6], %s2071_s10  ;;  %s1697_s9 = scalar_lea.vmem %s2202_s24, 128 }
  0xa4   : > { %1349 = vmatprep.subr.bf16.mxu0 %v1796_v0  ;;  %1355 = vmatprep.subr.bf16.mxu1 %v1796_v0  ;;  %p1698_p2 = scmp.ne.s32.totalorder %s2202_s24, %s1697_s9  ;;  %p2272_p9 = scmp.ne.s32.totalorder %s2267_s12, 0 }
  0xa6   : > { %1338 = vmatmul.mubr.msk.bf16.vlgmr.msra.gmra.mrb[0].mxu0 %vm333_vm1, %v316_v5  ;;  %1346 = vmatmul.mubr.msk.bf16.vlgmr.msra.gmra.mrb[0].mxu1 %vm333_vm1, %v316_v5  ;;  %p1699_p10 = pnand %p1698_p2, %p2272_p9 }
  0xa7   : > { %1351 = vmatprep.mubr.msk.bf16.mxu0 %vm1797_vm0, %v1796_v0  ;;  %1357 = vmatprep.mubr.msk.bf16.mxu1 %vm1797_vm0, %v1796_v0 }
  0xa8   : > { %p1700_p1 = pneg %p1699_p10 }
 0x179   : > { %v371_v7 = vpop.f32.mrb[0].mxu0  ;;  %v475_v12 = vpop.f32.mrb[0].mxu1 }
 0x17a   : > { %v2105_v8 = vpack.c.bf16 %v371_v7, %v371_v7  ;;  %v1339_v9 = vpop.f32.mrb[1].mxu0  ;;  %v2110_v13 = vpack.c.bf16 %v475_v12, %v475_v12  ;;  %v1347_v14 = vpop.f32.mrb[1].mxu1 }
 0x17b   : > { %v374_v10 = vpop.f32.mrb[2].mxu0  ;;  %v478_v15 = vpop.f32.mrb[2].mxu1 }
 0x17c   : > { %379 = vst.msk [vmem:[#allocation2] sm:$0xf] %vm378_vm2, %v2105_v8  ;;  %387 = vrot.lane.b32.xlu0 %v2105_v8, %s1798_s25  ;;  %v1340_v11 = vpop.f32.mrb[3].mxu0  ;;  %v1348_v16 = vpop.f32.mrb[3].mxu1 }
 0x180   : > { %597 = vrot.lane.b32.xlu0 %v2110_v13, %s1798_s25  ;;  %s1805_s25 = smov [#allocation13]  }
 0x183   : > { %v482_v17 = vld [vmem:[#allocation2] sm:$0xf] }
 0x184   : > { %v489_v18 = vsel %vm484_vm3, %v482_v17, 0 }
 0x185   : > { %1350 = vmatpush3.bf16.xpose.msra.mxu0 %v489_v18 }
 0x186   : > { %1361 = vmatprep.subr.bf16.mxu0 %v1796_v0 }
 0x18c   : > { %1352 = vmatmul.mubr.msk.bf16.vlgmr.msra.gmra.mrb[4].mxu0 %vm484_vm3, %v2110_v13 }
 0x18d   : > { %1363 = vmatprep.mubr.msk.bf16.mxu0 %vm1797_vm0, %v1796_v0 }
 0x1ee   : > { %v388_v19 = vpop.permute.xlu0 %387 }
 0x1ef   : > { %391 = vst.msk [vmem:[#allocation2 + $0x4] sm:$0xf] %vm378_vm2, %v388_v19 }
 0x1f2   : > { %v598_v22 = vpop.permute.xlu0 %597 }
 0x1f6   : > { %v593_v20 = vld [vmem:[#allocation2 + $0x4] sm:$0xf] }
 0x1f7   : > { %v603_v21 = vsel %vm484_vm3, %v593_v20, 0 }
 0x1f8   : > { %1362 = vmatpush3.bf16.xpose.msra.mxu0 %v603_v21 }
 0x1f9   : > { %1373 = vmatprep.subr.bf16.mxu0 %v1796_v0 }
 0x1ff   : > { %1364 = vmatmul.mubr.msk.bf16.vlgmr.msra.gmra.mrb[8].mxu0 %vm484_vm3, %v598_v22 }
 0x200   : > { %1375 = vmatprep.mubr.msk.bf16.mxu0 %vm1797_vm0, %v1796_v0  ;;  %1374 = vmatpush3.bf16.msra.mxu0 %v710_v51 }
 0x201   : > { %1385 = vmatprep.subr.bf16.mxu0 %v1796_v0 }
 0x25f   : > { %v525_v23 = vpop.f32.mrb[4].mxu0 }
 0x260   : > { %v1353_v24 = vpop.f32.mrb[5].mxu0  ;;  %v531_v25 = vsel %vm484_vm3, %v525_v23, -inf }
 0x261   : > { %532 = vmax.xlane.f32.xlu1 %v531_v25  ;;  %v528_v26 = vpop.f32.mrb[6].mxu0 }
 0x262   : > { %v1354_v27 = vpop.f32.mrb[7].mxu0 }
 0x2d2   : > { %v639_v28 = vpop.f32.mrb[8].mxu0 }
 0x2d3   : > { %v1365_v29 = vpop.f32.mrb[9].mxu0  ;;  %v645_v30 = vsel %vm484_vm3, %v639_v28, -inf }
 0x2d4   : > { %646 = vmax.xlane.f32.xlu1 %v645_v30  ;;  %v642_v31 = vpop.f32.mrb[10].mxu0 }
 0x2d5   : > { %v1366_v32 = vpop.f32.mrb[11].mxu0 }
 0x2e5   : > { %383 = vrot.lane.b32.xlu1 %v2105_v8, %s1799_s26  ;;  %s1701_s26 = sshll.u32 %s1805_s25, 4  ;;  %s1702_s26 = int_to_ptr.vmem [resolvable:$false] %s1701_s26 }
 0x2e6   : > { %p1704_p0 = scmp.lt.s32.totalorder %s2202_s24, %s1702_s26 }
 0x2ee   : > { %v533_v33 = vpop.xlane.xlu1 %532 }
 0x2ef   : > { %v534_v34 = vsub.f32 %v525_v23, %v533_v33 }
 0x2f1   : > { %v535_v35 = vmul.f32 1.442695, %v534_v34 }
 0x2f3   : > { %1539 = vpow2.f32 %v535_v35 }
 0x2fd   : > { %v1540_v36 = vpop.eup %1539 }
 0x2fe   : > { %v537_v37 = vsel %vm484_vm3, %v1540_v36, 0.0 }
 0x2ff   : > { %538 = vadd.xlane.f32.xlu0 %v537_v37 }
 0x361   : > { %v647_v38 = vpop.xlane.xlu1 %646 }
 0x362   : > { %v648_v39 = vsub.f32 %v639_v28, %v647_v38 }
 0x364   : > { %v649_v40 = vmul.f32 1.442695, %v648_v39 }
 0x365   : > { %v384_v41 = vpop.permute.xlu1 %383 }
 0x366   : > { %1541 = vpow2.f32 %v649_v40  ;;  %386 = vst.msk [vmem:[#allocation3] sm:$0xf] %vm378_vm2, %v384_v41 }
 0x36d   : > { %v483_v42 = vld [vmem:[#allocation3] sm:$0xf] }
 0x36e   : > { %v548_v43 = vsel %vm546_vm4, %v483_v42, 0 }
 0x36f   : > { %1356 = vmatpush3.bf16.msra.mxu1 %v548_v43  ;;  %v910_v43 = vld [vmem:[#allocation10 + $0x8] sm:$0xf] }
 0x370   : > { %v1542_v44 = vpop.eup %1541  ;;  %1367 = vmatprep.subr.bf16.mxu1 %v1796_v0 }
 0x371   : > { %v651_v45 = vsel %vm484_vm3, %v1542_v44, 0.0 }
 0x372   : > { %652 = vadd.xlane.f32.xlu1 %v651_v45 }
 0x383   : > { %392 = vrot.lane.b32.xlu1 %v2105_v8, %s1800_s11  ;;  %s1703_s11 = scalar_lea.vmem %s1702_s26, 256 }
 0x384   : > { %p1705_p7 = scmp.lt.s32.totalorder %s1703_s11, %s1697_s9 }
 0x386   : > { %p1706_p5 = por %p1705_p7, %p1704_p0 }
 0x387   : > { %397 = vrot.lane.b32.xlu1 %v2105_v8, %s1801_s27 }
 0x388   : > { %p1707_p8 = pnand %p1706_p5, %p1700_p1 }
 0x38b   : > { %802 = vrot.lane.b32.xlu1 %v2110_v13, %s1801_s27 }
 0x38c   : > { %v539_v46 = vpop.xlane.xlu0 %538 }
 0x38d   : > { %1543 = vrcp.f32 %v539_v46 }
 0x397   : > { %v1544_v47 = vpop.eup %1543 }
 0x398   : > { %v541_v48 = vmul.f32 %v1544_v47, %v1540_v36 }
 0x39a   : > { %v542_v49 = vpack.c.bf16 %v541_v48, %v541_v48 }
 0x39c   : > { %1358 = vmatmul.mubr.msk.bf16.vlgmr.msra.gmra.mrb[4].mxu1 %vm484_vm3, %v542_v49 }
 0x39d   : > { %1369 = vmatprep.mubr.msk.bf16.mxu1 %vm1797_vm0, %v1796_v0 }
 0x3ff   : > { %v653_v52 = vpop.xlane.xlu1 %652 }
 0x400   : > { %1545 = vrcp.f32 %v653_v52 }
 0x403   : > { %v393_v53 = vpop.permute.xlu1 %392 }
 0x404   : > { %396 = vst.msk [vmem:[#allocation3 + $0x4] sm:$0xf] %vm378_vm2, %v393_v53 }
 0x407   : > { %v398_v54 = vpop.permute.xlu1 %397 }
 0x408   : > { %401 = vst.msk [vmem:[#allocation2 + $0x8] sm:$0xf] %vm378_vm2, %v398_v54 }
 0x40a   : > { %v1546_v55 = vpop.eup %1545 }
 0x40b   : > { %v655_v56 = vmul.f32 %v1546_v55, %v1542_v44  ;;  %v595_v57 = vld [vmem:[#allocation3 + $0x4] sm:$0xf]  ;;  %v803_v12 = vpop.permute.xlu1 %802  ;;  %v915_v44 = vsel %vm546_vm4, %v910_v43, 0 }
 0x40c   : > { %v661_v59 = vsel %vm546_vm4, %v595_v57, 0 }
 0x40d   : > { %1368 = vmatpush3.bf16.msra.mxu1 %v661_v59  ;;  %v656_v60 = vpack.c.bf16 %v655_v56, %v655_v56 }
 0x40e   : > { %1379 = vmatprep.subr.bf16.mxu1 %v1796_v0 }
 0x40f   : > { %v799_v5 = vld [vmem:[#allocation2 + $0x8] sm:$0xf] }
 0x410   : > { %1370 = vmatmul.mubr.msk.bf16.vlgmr.msra.gmra.mrb[8].mxu1 %vm484_vm3, %v656_v60  ;;  %v808_v11 = vsel %vm484_vm3, %v799_v5, 0 }
 0x411   : > { %1380 = vmatpush3.bf16.msra.mxu1 %v756_v61  ;;  %1381 = vmatprep.mubr.msk.bf16.mxu1 %vm1797_vm0, %v1796_v0 }
 0x412   : > { %1391 = vmatprep.subr.bf16.mxu1 %v1796_v0 }
 0x46f   : > { %v584_v62 = vpop.f32.mrb[4].mxu1 }
 0x470   : > { %v590_v63 = vpack.c.bf16 %v584_v62, %v584_v62  ;;  %v1359_v1 = vpop.f32.mrb[5].mxu1 }
 0x471   : > { %v587_v2 = vpop.f32.mrb[6].mxu1 }
 0x472   : > { %v1360_v3 = vpop.f32.mrb[7].mxu1  ;;  %1382 = vmatmul.mubr.msk.bf16.vlgmr.msra.gmra.mrb[12].mxu1 %vm484_vm3, %v590_v63 }
 0x473   : > { %1393 = vmatprep.mubr.msk.bf16.mxu1 %vm1797_vm0, %v1796_v0 }
 0x4e3   : > { %v697_v4 = vpop.f32.mrb[8].mxu1 }
 0x4e4   : > { %v703_v6 = vpack.c.bf16 %v697_v4, %v697_v4  ;;  %v1371_v7 = vpop.f32.mrb[9].mxu1 }
 0x4e5   : > { %v700_v9 = vpop.f32.mrb[10].mxu1  ;;  %v1070_v7 = vld [vmem:[#allocation10 + $0xc] sm:$0xf] }
 0x4e6   : > { %v1372_v10 = vpop.f32.mrb[11].mxu1  ;;  %1376 = vmatmul.mubr.msk.bf16.vlgmr.msra.gmra.mrb[12].mxu0 %vm484_vm3, %v703_v6  ;;  %v1075_v9 = vsel %vm546_vm4, %v1070_v7, 0 }
 0x4e7   : > { %1386 = vmatpush3.bf16.xpose.msra.mxu0 %v808_v11  ;;  %1387 = vmatprep.mubr.msk.bf16.mxu0 %vm1797_vm0, %v1796_v0 }
 0x4e8   : > { %1397 = vmatprep.subr.bf16.mxu0 %v1796_v0 }
 0x4ee   : > { %1388 = vmatmul.mubr.msk.bf16.vlgmr.msra.gmra.mrb[16].mxu0 %vm484_vm3, %v803_v12 }
 0x4ef   : > { %1399 = vmatprep.mubr.msk.bf16.mxu0 %vm1797_vm0, %v1796_v0  ;;  %1398 = vmatpush3.bf16.msra.mxu0 %v915_v44 }
 0x4f0   : > { %1409 = vmatprep.subr.bf16.mxu0 %v1796_v0 }
 0x545   : > { %v792_v14 = vpop.f32.mrb[12].mxu1 }
 0x546   : > { %v1383_v15 = vpop.f32.mrb[13].mxu1 }
 0x547   : > { %v795_v16 = vpop.f32.mrb[14].mxu1 }
 0x548   : > { %v1384_v17 = vpop.f32.mrb[15].mxu1 }
 0x549   : > { %v1297_v17 = vld [vmem:[#allocation12] ss:$0 sm:$0xff] }
 0x5b9   : > { %v746_v18 = vpop.f32.mrb[12].mxu0 }
 0x5ba   : > { %v2161_v19 = vadd.f32 %v792_v14, %v746_v18  ;;  %v1377_v20 = vpop.f32.mrb[13].mxu0 }
 0x5bb   : > { %v749_v21 = vpop.f32.mrb[14].mxu0 }
 0x5bc   : > { %v1378_v22 = vpop.f32.mrb[15].mxu0 }
 0x5c1   : > { %v844_v23 = vpop.f32.mrb[16].mxu0 }
 0x5c2   : > { %v1389_v24 = vpop.f32.mrb[17].mxu0  ;;  %v850_v25 = vsel %vm484_vm3, %v844_v23, -inf }
 0x5c3   : > { %851 = vmax.xlane.f32.xlu0 %v850_v25  ;;  %v847_v26 = vpop.f32.mrb[18].mxu0 }
 0x5c4   : > { %v1390_v27 = vpop.f32.mrb[19].mxu0 }
 0x5d9   : > { %402 = vrot.lane.b32.xlu0 %v2105_v8, %s1802_s6 }
 0x5dd   : > { %407 = vrot.lane.b32.xlu0 %v2105_v8, %s1803_s14 }
 0x5e1   : > { %962 = vrot.lane.b32.xlu0 %v2110_v13, %s1803_s14 }
 0x650   : > { %v852_v28 = vpop.xlane.xlu0 %851 }
 0x651   : > { %v853_v29 = vsub.f32 %v844_v23, %v852_v28 }
 0x653   : > { %v854_v30 = vmul.f32 1.442695, %v853_v29 }
 0x654   : > { %v403_v31 = vpop.permute.xlu0 %402 }
 0x655   : > { %1547 = vpow2.f32 %v854_v30  ;;  %406 = vst.msk [vmem:[#allocation3 + $0x8] sm:$0xf] %vm378_vm2, %v403_v31 }
 0x658   : > { %v408_v32 = vpop.permute.xlu0 %407 }
 0x659   : > { %411 = vst.msk [vmem:[#allocation2 + $0xc] sm:$0xf] %vm378_vm2, %v408_v32 }
 0x65c   : > { %v801_v33 = vld [vmem:[#allocation3 + $0x8] sm:$0xf]  ;;  %v963_v42 = vpop.permute.xlu0 %962 }
 0x65d   : > { %v866_v34 = vsel %vm546_vm4, %v801_v33, 0 }
 0x65e   : > { %1392 = vmatpush3.bf16.msra.mxu1 %v866_v34 }
 0x65f   : > { %v1548_v35 = vpop.eup %1547  ;;  %1403 = vmatprep.subr.bf16.mxu1 %v1796_v0 }
 0x660   : > { %v856_v36 = vsel %vm484_vm3, %v1548_v35, 0.0  ;;  %v959_v39 = vld [vmem:[#allocation2 + $0xc] sm:$0xf] }
 0x661   : > { %857 = vadd.xlane.f32.xlu1 %v856_v36  ;;  %v968_v41 = vsel %vm484_vm3, %v959_v39, 0 }
 0x6ee   : > { %v858_v13 = vpop.xlane.xlu1 %857 }
 0x6ef   : > { %1549 = vrcp.f32 %v858_v13 }
 0x6f9   : > { %v1550_v37 = vpop.eup %1549 }
 0x6fa   : > { %v860_v38 = vmul.f32 %v1550_v37, %v1548_v35 }
 0x6fc   : > { %v861_v40 = vpack.c.bf16 %v860_v38, %v860_v38 }
 0x6fe   : > { %1394 = vmatmul.mubr.msk.bf16.vlgmr.msra.gmra.mrb[16].mxu1 %vm484_vm3, %v861_v40 }
 0x6ff   : > { %1404 = vmatpush3.bf16.xpose.msra.mxu1 %v968_v41  ;;  %1405 = vmatprep.mubr.msk.bf16.mxu1 %vm1797_vm0, %v1796_v0 }
 0x700   : > { %1415 = vmatprep.subr.bf16.mxu1 %v1796_v0 }
 0x706   : > { %1406 = vmatmul.mubr.msk.bf16.vlgmr.msra.gmra.mrb[20].mxu1 %vm484_vm3, %v963_v42 }
 0x707   : > { %1417 = vmatprep.mubr.msk.bf16.mxu1 %vm1797_vm0, %v1796_v0  ;;  %1416 = vmatpush3.bf16.msra.mxu1 %v1075_v9 }
 0x7d1   : > { %v902_v45 = vpop.f32.mrb[16].mxu1 }
 0x7d2   : > { %v908_v46 = vpack.c.bf16 %v902_v45, %v902_v45  ;;  %v1395_v47 = vpop.f32.mrb[17].mxu1 }
 0x7d3   : > { %v905_v48 = vpop.f32.mrb[18].mxu1 }
 0x7d4   : > { %v1396_v49 = vpop.f32.mrb[19].mxu1  ;;  %1400 = vmatmul.mubr.msk.bf16.vlgmr.msra.gmra.mrb[20].mxu0 %vm484_vm3, %v908_v46 }
 0x7d5   : > { %1411 = vmatprep.mubr.msk.bf16.mxu0 %vm1797_vm0, %v1796_v0 }
 0x7d9   : > { %v1004_v50 = vpop.f32.mrb[20].mxu1 }
 0x7da   : > { %v1407_v51 = vpop.f32.mrb[21].mxu1  ;;  %v1010_v52 = vsel %vm484_vm3, %v1004_v50, -inf }
 0x7db   : > { %1011 = vmax.xlane.f32.xlu0 %v1010_v52  ;;  %v1007_v53 = vpop.f32.mrb[22].mxu1 }
 0x7dc   : > { %v1408_v54 = vpop.f32.mrb[23].mxu1 }
 0x868   : > { %v1012_v55 = vpop.xlane.xlu0 %1011 }
 0x869   : > { %v1013_v56 = vsub.f32 %v1004_v50, %v1012_v55 }
 0x86b   : > { %v1014_v57 = vmul.f32 1.442695, %v1013_v56 }
 0x86d   : > { %1551 = vpow2.f32 %v1014_v57 }
 0x877   : > { %v1552_v58 = vpop.eup %1551 }
 0x878   : > { %v1016_v59 = vsel %vm484_vm3, %v1552_v58, 0.0 }
 0x879   : > { %1017 = vadd.xlane.f32.xlu1 %v1016_v59 }
 0x88a   : > { %412 = vrot.lane.b32.xlu1 %v2105_v8, %s1804_s29 }
 0x8a7   : > { %v951_v60 = vpop.f32.mrb[20].mxu0 }
 0x8a8   : > { %v957_v0 = vadd.f32 %v951_v60, %v2161_v19  ;;  %v1401_v61 = vpop.f32.mrb[21].mxu0 }
 0x8a9   : > { %v954_v62 = vpop.f32.mrb[22].mxu0 }
 0x8aa   : > { %v1402_v63 = vpop.f32.mrb[23].mxu0 }
 0x906   : > { %v1018_v1 = vpop.xlane.xlu1 %1017 }
 0x907   : > { %1553 = vrcp.f32 %v1018_v1 }
 0x90a   : > { %v413_v2 = vpop.permute.xlu1 %412 }
 0x90b   : > { %416 = vst.msk [vmem:[#allocation3 + $0xc] sm:$0xf] %vm378_vm2, %v413_v2 }
 0x911   : > { %v1554_v3 = vpop.eup %1553 }
 0x912   : > { %v1020_v4 = vmul.f32 %v1554_v3, %v1552_v58  ;;  %v961_v5 = vld [vmem:[#allocation3 + $0xc] sm:$0xf] }
 0x913   : > { %v1026_v6 = vsel %vm546_vm4, %v961_v5, 0 }
 0x914   : > { %1410 = vmatpush3.bf16.msra.mxu0 %v1026_v6  ;;  %v1021_v8 = vpack.c.bf16 %v1020_v4, %v1020_v4 }
 0x917   : > { %1412 = vmatmul.mubr.msk.bf16.vlgmr.msra.gmra.mrb[24].mxu0 %vm484_vm3, %v1021_v8 }
 0x9ea   : > { %v1062_v10 = vpop.f32.mrb[24].mxu0 }
 0x9eb   : > { %v1068_v11 = vpack.c.bf16 %v1062_v10, %v1062_v10  ;;  %v1413_v12 = vpop.f32.mrb[25].mxu0 }
 0x9ec   : > { %v1065_v14 = vpop.f32.mrb[26].mxu0 }
 0x9ed   : > { %v1414_v15 = vpop.f32.mrb[27].mxu0  ;;  %1418 = vmatmul.mubr.msk.bf16.vlgmr.msra.gmra.mrb[24].mxu1 %vm484_vm3, %v1068_v11 }
 0xac0   : > { %v1111_v16 = vpop.f32.mrb[24].mxu1 }
 0xac1   : > { %v1117_v18 = vadd.f32 %v1111_v16, %v957_v0  ;;  %v1419_v19 = vpop.f32.mrb[25].mxu1 }
 0xac2   : > { %v1114_v20 = vpop.f32.mrb[26].mxu1 }
 0xac3   : > { %v1125_v21 = vadd.f32 %v1297_v17, %v1117_v18  ;;  %v1420_v22 = vpop.f32.mrb[27].mxu1 }
 0xac5   : > { %1126 = vst.msk [vmem:[%s309_s30] sm:$0xff] %vm333_vm1, %v1125_v21 }
 0xac6   : > { %1710 = shalt.err (!%p1707_p8)
}
 0xac7   : > { %s1711_s10 = scalar_lea.hbm %s2200_s8, 128  ;;  %s1715_s14 = scalar_lea.hbm %s2255_s5, 256 }
 0xac8   : > { %p1712_p3 = scmp.ne.s32.totalorder %s2200_s8, %s1711_s10  ;;  %p1716_p13 = scmp.lt.u32.totalorder %s2200_s8, %s2255_s5 }
 0xac9   : > { %p1717_p12 = scmp.lt.u32.totalorder %s1715_s14, %s1711_s10  ;;  %p1719_p2 = scmp.lt.u32.totalorder %s1711_s10, %s2200_s8 }
 0xaca   : > { %p1713_p11 = pnand %p1712_p3, %p2272_p9 }
 0xacb   : > { %p1718_p4 = por %p1717_p12, %p1716_p13 }
 0xacc   : > { %p1714_p6 = pneg %p1713_p11 }
 0xacd   : > { %p1720_p10 = por %p1719_p2, %p1718_p4 }
 0xacf   : > { %p1721_p1 = pnand %p1720_p10, %p1714_p6 }
 0xad1   : > { %1724 = shalt.err (!%p1721_p1)
}
 0xad2   : > { %1439 = dma.vmem_to_hbm [thread:$0]  (%p2272_p9), %s2202_s24, 128, %s2200_s8, %s1128_s21  }
 0xad3 PF: > { %s1154_s30 = sand.u32 1, %s1767_s18   ;;  %p2273_p0 = scmp.ne.s32.totalorder %s2268_s15, 0 }
 0xad4   : > { %p2274_p7 = scmp.ge.s32.totalorder %s1787_s23, 2  ;;  %s1155_s17 = scalar_lea.sflag [#allocation6], %s1154_s30 }
 0xad6   : > { %p1459_p5 = pnand %p2274_p7, %p2273_p0 }
 0xad8   : > { %1762 = dma.done.wait (!%p1459_p5), %s1155_s17, 128  }
 0xad9   : > { %1764 = vsyncadd (!%p1459_p5), %s1155_s17, 4294967168  ;;  %s23_s23 = sadd.s32 1, %s1787_s23   ;;  %s2275_s18 = smov %s1771_s19 }
 0xada   : > { %p20_p8 = scmp.ge.s32.totalorder %s23_s23, 4   ;;  %s2276_s19 = smov %s1775_s20 }
 0xadb   : > { %s2277_s20 = smov %s2021_s13  ;;  %s2278_s21 = smov %s1783_s22 }
 0xadc   : > { %s2279_s22 = smov %s2281_s7  ;;  %22 = sbr.rel (!%p20_p8) target bundleno = 8 (0x8), region = 121 }
 0xae3   :  { %1160 = vsyncpa [#allocation5], 1 }
 0xae4   :  { %1162 = vsyncpa [#allocation5 + $0x1], 1 }
 0xae5   :  { %1163 = vsyncpa [#allocation8], 1 }
 0xae6   :  { %1164 = vsyncpa [#allocation11], 1 }
 0xae7   :  { %1165 = vsyncpa [#allocation6], 1 }
 0xae8   :  { %1167 = vsyncpa [#allocation6 + $0x1], 1 }

</bundles_post_ra>
